<compile_context>
chip_gen: v7x
topology: tpu7x:2x2x1
jax: 0.10.0
libtpu: 0.0.40
codegen_flags: <defaults>
</compile_context>

<pallas_src>
import functools

import jax
import jax.numpy as jnp
from jax.experimental import pallas as pl
from jax.experimental.pallas import tpu as pltpu

_VPU_CIN_MAX = 16  # C_in <= this -> VPU broadcast-FMA path instead of a padded MXU pass


def _linear1x1_kernel(x_ref, w_ref, b_ref, o_ref, *, use_vpu, cast_bf16):
    """One (batch, HW-tile) grid step.

    x_ref: [1, C_in, T]  w_ref: [C_out, C_in]  b_ref: [C_out, 1]  o_ref: [1, C_out, T]
    """
    x = x_ref[0]          # [C_in, T]
    w = w_ref[...]        # [C_out, C_in]
    b = b_ref[...]        # [C_out, 1] -> lane-broadcast over T
    if use_vpu:
        # K is tiny: C_in broadcast mul-adds on the VPU; w[:, i] broadcasts over
        # lanes, x[i, :] over sublanes. Avoids the MXU push + result-FIFO drain.
        c_in = w.shape[1]
        acc = w[:, 0:1].astype(jnp.float32) * x[0:1, :].astype(jnp.float32)
        for i in range(1, c_in):
            acc = acc + w[:, i:i + 1].astype(jnp.float32) * x[i:i + 1, :].astype(jnp.float32)
        y = acc + b.astype(jnp.float32)
    else:
        # Real channel counts: MXU matmul; bf16 operands with f32 accumulation
        # when profitable (v6e/v7x MXU is bf16-native).
        lhs = w.astype(jnp.bfloat16) if cast_bf16 else w
        rhs = x.astype(jnp.bfloat16) if cast_bf16 else x
        y = jnp.dot(lhs, rhs, preferred_element_type=jnp.float32) + b.astype(jnp.float32)
    o_ref[0] = y.astype(o_ref.dtype)


def _pick_hw_tile(hw, max_tile=2048):
    """Largest tile <= max_tile dividing hw; prefer multiples of 128 (lane-dense stores)."""
    if hw <= max_tile:
        return hw
    start = max_tile - (max_tile % 128)
    for t in range(start, 0, -128):
        if hw % t == 0:
            return t
    for t in range(max_tile, 0, -1):
        if hw % t == 0:
            return t
    return hw


def linear_1x1(x, weight, bias):
    """PyTorch nn.Conv2d(c_in, c_out, kernel_size=(1,1), bias=True) forward.

    x:      [B, C_in, H, W]
    weight: [C_out, C_in, 1, 1]
    bias:   [C_out]
    returns [B, C_out, H, W]
    """
    B, C_in, H, W = x.shape
    C_out = weight.shape[0]
    HW = H * W

    x2 = x.reshape(B, C_in, HW)          # free reshape; NCHW kept, H*W on lanes
    w2 = weight.reshape(C_out, C_in)
    b2 = bias.reshape(C_out, 1)

    tile_hw = _pick_hw_tile(HW)
    grid = (B, HW // tile_hw)

    use_vpu = C_in <= _VPU_CIN_MAX
    cast_bf16 = (not use_vpu) and C_in >= 128 and C_out >= 128 and x.dtype == jnp.float32

    itemsize = jnp.dtype(x.dtype).itemsize
    # Double-buffered in+out tiles + resident weight/bias, with headroom; clamp
    # to stay inside v5e's 16 MiB scoped floor and well under v7x's 64 MiB VMEM.
    tile_bytes = 2 * (C_in * tile_hw + C_out * tile_hw) * itemsize
    const_bytes = (C_out * C_in + C_out) * itemsize
    vmem_bytes = int(min(max(4 * (tile_bytes + const_bytes), 16 << 20), 96 << 20))

    cost = pl.CostEstimate(
        flops=2 * B * C_out * C_in * HW,
        transcendentals=0,
        bytes_accessed=(B * C_in * HW + B * C_out * HW + C_out * C_in + C_out) * itemsize,
    )

    kernel = functools.partial(_linear1x1_kernel, use_vpu=use_vpu, cast_bf16=cast_bf16)

    out = pl.pallas_call(
        kernel,
        out_shape=jax.ShapeDtypeStruct((B, C_out, HW), x.dtype),
        grid=grid,
        in_specs=[
            pl.BlockSpec((1, C_in, tile_hw), lambda b, j: (b, 0, j),
                         memory_space=pltpu.MemorySpace.VMEM),
            pl.BlockSpec((C_out, C_in), lambda b, j: (0, 0),
                         memory_space=pltpu.MemorySpace.VMEM),
            pl.BlockSpec((C_out, 1), lambda b, j: (0, 0),
                         memory_space=pltpu.MemorySpace.VMEM),
        ],
        out_specs=pl.BlockSpec((1, C_out, tile_hw), lambda b, j: (b, 0, j),
                               memory_space=pltpu.MemorySpace.VMEM),
        compiler_params=pltpu.CompilerParams(
            dimension_semantics=("parallel", "parallel"),
            vmem_limit_bytes=vmem_bytes,
        ),
        cost_estimate=cost,
    )(x2, w2, b2)
    return out.reshape(B, C_out, H, W)


# --------------------------- pure-JAX reference ---------------------------
def reference(x, weight, bias):
    w = weight.reshape(weight.shape[0], weight.shape[1]).astype(jnp.float32)
    y = jnp.einsum(
        "bihw,oi->bohw",
        x.astype(jnp.float32),
        w,
        precision=jax.lax.Precision.HIGHEST,
    )
    return y + bias[None, :, None, None]


if __name__ == "__main__":
    B, C_in, C_out, H, W = 2, 4, 32, 16, 16

    key = jax.random.PRNGKey(0)
    kx, kw, kb = jax.random.split(key, 3)
    x = jax.random.normal(kx, (B, C_in, H, W), jnp.float32)
    weight = 0.1 * jax.random.normal(kw, (C_out, C_in, 1, 1), jnp.float32)
    bias = 0.01 * jax.random.normal(kb, (C_out,), jnp.float32)

    out = jax.block_until_ready(linear_1x1(x, weight, bias))
    ref = reference(x, weight, bias)

    assert out.shape == (B, C_out, H, W), out.shape
    max_err = float(jnp.max(jnp.abs(out - ref)))
    assert max_err < 1e-3, f"max abs error {max_err}"
    print("KERNEL_OK")
</pallas_src>

<mosaic_0001>
module attributes {stable_mosaic.version = 11 : i64} {
  func.func @_linear1x1_kernel(%arg0: i32, %arg1: i32, %arg2: memref<1x4x256xf32, #tpu.memory_space<vmem>>, %arg3: memref<32x4xf32, #tpu.memory_space<vmem>>, %arg4: memref<32x1xf32, #tpu.memory_space<vmem>>, %arg5: memref<1x32x256xf32, #tpu.memory_space<vmem>>) attributes {dimension_semantics = [#tpu.dimension_semantics<parallel>, #tpu.dimension_semantics<parallel>], iteration_bounds = array<i64: 2, 1>, scalar_prefetch = 0 : i64, scratch_operands = 0 : i64, tpu.core_type = #tpu.core_type<tc>, window_params = [{transform_indices = @transform_0, window_bounds = array<i64: 1, 4, 256>}, {pipeline_mode = #tpu.pipeline_mode<synchronous>, transform_indices = @transform_1, window_bounds = array<i64: 32, 4>}, {pipeline_mode = #tpu.pipeline_mode<synchronous>, transform_indices = @transform_2, window_bounds = array<i64: 32, 1>}, {transform_indices = @transform_3, window_bounds = array<i64: 1, 32, 256>}]} {
    %c0 = arith.constant 0 : index
    %c0_0 = arith.constant 0 : index
    %c0_1 = arith.constant 0 : index
    %0 = vector.load %arg2[%c0, %c0_0, %c0_1] : memref<1x4x256xf32, #tpu.memory_space<vmem>>, vector<1x4x256xf32>
    %1 = vector.shape_cast %0 : vector<1x4x256xf32> to vector<4x256xf32>
    %c0_2 = arith.constant 0 : index
    %c0_3 = arith.constant 0 : index
    %2 = vector.load %arg3[%c0_2, %c0_3] : memref<32x4xf32, #tpu.memory_space<vmem>>, vector<32x4xf32>
    %c0_4 = arith.constant 0 : index
    %c0_5 = arith.constant 0 : index
    %3 = vector.load %arg4[%c0_4, %c0_5] : memref<32x1xf32, #tpu.memory_space<vmem>>, vector<32x1xf32>
    %4 = vector.extract_strided_slice %2 {offsets = [0, 0], sizes = [32, 1], strides = [1, 1]} : vector<32x4xf32> to vector<32x1xf32>
    %5 = vector.extract_strided_slice %1 {offsets = [0, 0], sizes = [1, 256], strides = [1, 1]} : vector<4x256xf32> to vector<1x256xf32>
    %6 = vector.broadcast %4 : vector<32x1xf32> to vector<32x256xf32>
    %7 = vector.broadcast %5 : vector<1x256xf32> to vector<32x256xf32>
    %8 = arith.mulf %6, %7 : vector<32x256xf32>
    %9 = vector.extract_strided_slice %2 {offsets = [0, 1], sizes = [32, 1], strides = [1, 1]} : vector<32x4xf32> to vector<32x1xf32>
    %10 = vector.extract_strided_slice %1 {offsets = [1, 0], sizes = [1, 256], strides = [1, 1]} : vector<4x256xf32> to vector<1x256xf32>
    %11 = vector.broadcast %9 : vector<32x1xf32> to vector<32x256xf32>
    %12 = vector.broadcast %10 : vector<1x256xf32> to vector<32x256xf32>
    %13 = arith.mulf %11, %12 : vector<32x256xf32>
    %14 = arith.addf %8, %13 : vector<32x256xf32>
    %15 = vector.extract_strided_slice %2 {offsets = [0, 2], sizes = [32, 1], strides = [1, 1]} : vector<32x4xf32> to vector<32x1xf32>
    %16 = vector.extract_strided_slice %1 {offsets = [2, 0], sizes = [1, 256], strides = [1, 1]} : vector<4x256xf32> to vector<1x256xf32>
    %17 = vector.broadcast %15 : vector<32x1xf32> to vector<32x256xf32>
    %18 = vector.broadcast %16 : vector<1x256xf32> to vector<32x256xf32>
    %19 = arith.mulf %17, %18 : vector<32x256xf32>
    %20 = arith.addf %14, %19 : vector<32x256xf32>
    %21 = vector.extract_strided_slice %2 {offsets = [0, 3], sizes = [32, 1], strides = [1, 1]} : vector<32x4xf32> to vector<32x1xf32>
    %22 = vector.extract_strided_slice %1 {offsets = [3, 0], sizes = [1, 256], strides = [1, 1]} : vector<4x256xf32> to vector<1x256xf32>
    %23 = vector.broadcast %21 : vector<32x1xf32> to vector<32x256xf32>
    %24 = vector.broadcast %22 : vector<1x256xf32> to vector<32x256xf32>
    %25 = arith.mulf %23, %24 : vector<32x256xf32>
    %26 = arith.addf %20, %25 : vector<32x256xf32>
    %27 = vector.broadcast %3 : vector<32x1xf32> to vector<32x256xf32>
    %28 = arith.addf %26, %27 : vector<32x256xf32>
    %c0_6 = arith.constant 0 : index
    %c0_7 = arith.constant 0 : index
    %c0_8 = arith.constant 0 : index
    %29 = vector.load %arg5[%c0_6, %c0_7, %c0_8] : memref<1x32x256xf32, #tpu.memory_space<vmem>>, vector<1x32x256xf32>
    %30 = vector.shape_cast %29 : vector<1x32x256xf32> to vector<32x256xf32>
    %31 = vector.shape_cast %28 : vector<32x256xf32> to vector<1x32x256xf32>
    tpu.vector_store %arg5[%c0_6, %c0_7, %c0_8], %31 {strides = array<i32>} : memref<1x32x256xf32, #tpu.memory_space<vmem>>, vector<1x32x256xf32>,
    return
  }
  func.func @transform_0(%arg0: i32, %arg1: i32) -> (i32, i32, i32) {
    %c0_i32 = arith.constant 0 : i32
    %c0_i32_0 = arith.constant 0 : i32
    return %arg0, %c0_i32, %arg1 : i32, i32, i32
  }
  func.func @transform_1(%arg0: i32, %arg1: i32) -> (i32, i32) {
    %c0_i32 = arith.constant 0 : i32
    %c0_i32_0 = arith.constant 0 : i32
    %c0_i32_1 = arith.constant 0 : i32
    return %c0_i32, %c0_i32_0 : i32, i32
  }
  func.func @transform_2(%arg0: i32, %arg1: i32) -> (i32, i32) {
    %c0_i32 = arith.constant 0 : i32
    %c0_i32_0 = arith.constant 0 : i32
    %c0_i32_1 = arith.constant 0 : i32
    return %c0_i32, %c0_i32_0 : i32, i32
  }
  func.func @transform_3(%arg0: i32, %arg1: i32) -> (i32, i32, i32) {
    %c0_i32 = arith.constant 0 : i32
    %c0_i32_0 = arith.constant 0 : i32
    return %arg0, %c0_i32, %arg1 : i32, i32, i32
  }
}

</mosaic_0001>

<bundles_post_ra>
// kernel: tpu_custom_call.1
= control target key start
LH: loop header
LB: loop body
LE: loop exit
PB: predicated region body
PF: predicated region fallthrough
CT: control target
= control target key end

     0   :  { %8 = vsyncpa [#allocation3], 0  ;;  %s896_s0 = inlined_call_operand.vmem [shape: f32[2,4,256], index: 0, kind: input, shape index: {}]   ;;  %s897_s1 = inlined_call_operand.vmem [shape: f32[32,4], index: 1, kind: input, shape index: {}]   ;;  %s898_s2 = inlined_call_operand.vmem [shape: f32[32,1], index: 2, kind: input, shape index: {}]   ;;  %s899_s3 = inlined_call_operand.hbm [shape: f32[2,32,256], index: 3, kind: output, shape index: {}]  }
   0x1   :  { %10 = vsyncpa [#allocation3 + $0x1], 0  ;;  %s730_s12 = smov 0   ;;  %s732_s13 = smov 0  }
   0x2   :  { %s734_s14 = smov 0   ;;  %s736_s15 = smov 0  }
   0x3   :  { %s738_s16 = smov 0   ;;  %s740_s17 = smov 0  }
   0x4 LB: > { %s537_s18 = sadd.s32 4294967295, %s701_s17   ;;  %s538_s19 = sadd.s32 4294967294, %s701_s17   ;;  %s701_s17 = sphi %s740_s17, %s16_s17   ;;  %s697_s16 = sphi %s738_s16, %s906_s16   ;;  %s693_s15 = sphi %s736_s15, %s905_s15   ;;  %s689_s14 = sphi %s734_s14, %s904_s14   ;;  %s685_s13 = sphi %s732_s13, %s903_s13   ;;  %s681_s12 = sphi %s730_s12, %s902_s12  }
   0x5   : > { %s28_s20 = sadd.s32 1, %s697_s16  ;;  %s107_s21 = sadd.s32 1, %s689_s14 }
   0x6   : > { %p30_p0 = scmp.ge.s32.totalorder %s28_s20, 2  ;;  %p117_p1 = scmp.ne.s32.totalorder %s689_s14, %s685_s13 }
   0x7   : > { %p118_p2 = scmp.eq.s32.totalorder %s537_s18, 1  ;;  %p123_p3 = scmp.ne.s32.totalorder %s685_s13, %s681_s12 }
   0x8   : > { %s908_s20 = smov (%p30_p0, %s28_s20), 0  ;;  %p124_p5 = scmp.eq.s32.totalorder %s538_s19, 1 }
   0x9   : > { %p770_p4 = por %p118_p2, %p117_p1  ;;  %s102_s23 = ssub.s32 %s697_s16, %s908_s20 }
   0xa   : > { %p541_p6 = scmp.ge.s32.totalorder %s701_s17, 1  ;;  %p105_p7 = scmp.eq.s32.totalorder %s102_s23, 0 }
   0xb   : > { %p777_p8 = por %p124_p5, %p123_p3  ;;  %p161_p9 = scmp.lt.s32.totalorder %s701_s17, 3 }
   0xc   : > { %s783_s25 = scalar_select %p105_p7, %s689_s14, %s107_s21  }
   0xd   : > { %p162_p10 = pnand %p541_p6, %p161_p9 }
   0xe   : > { %v203_v0 = vld [vmem:[%s897_s1 + $0x10] sm:$0xff] (!%p162_p10)  ;;  %v201_v1 = vld [vmem:[%s897_s1] sm:$0xff] (!%p162_p10)  ;;  %v703_v2 = vmov (!%p162_p10), 0   ;;  %v204_v3 = vld [vmem:[%s897_s1 + $0x18] sm:$0xff] (!%p162_p10)  ;;  %v704_v5 = vmov (!%p162_p10), 1   ;;  %v705_v6 = vmov (!%p162_p10), 2   ;;  %v230_v16 = vlaneseq (!%p162_p10) }
   0xf   : > { %165 = sbr.rel (%p162_p10) target bundleno = 209 (0xd1), region = 32  ;;  %614 = vset.pattern.permute.xlu1 (!%p162_p10), %v703_v2  ;;  %613 = vset.pattern.permute.xlu0 (!%p162_p10), %v703_v2  ;;  %v202_v4 = vld [vmem:[%s897_s1 + $0x8] sm:$0xff] (!%p162_p10)  ;;  %v706_v7 = vmov (!%p162_p10), 3   ;;  %v205_v9 = vld [vmem:[%s898_s2] sm:$0xff] (!%p162_p10)  ;;  %v207_v10 = vld [vmem:[%s898_s2 + $0x10] sm:$0xff] (!%p162_p10)  ;;  %p190_p11 = scmp.lt.s32.totalorder (!%p162_p10), %s693_s15, 1 }
  0x10   : > { %221 = vperm.xlu1 (!%p162_p10), %614, %v203_v0   ;;  %211 = vperm.xlu0 (!%p162_p10), %613, %v201_v1   ;;  %v206_v8 = vld [vmem:[%s898_s2 + $0x8] sm:$0xff] (!%p162_p10)  ;;  %v208_v11 = vld [vmem:[%s898_s2 + $0x18] sm:$0xff] (!%p162_p10)  ;;  %v231_v19 = vshrl.u32 (!%p162_p10), %v230_v16, 7  ;;  %s186_s30 = sand.u32 (!%p162_p10), 1, %s685_s13   ;;  %s551_s6 = sshll.u32 (!%p162_p10), %s693_s15, 10 }
  0x11   : > { %s542_s4 = sshll.u32 (!%p162_p10), %s186_s30, 6  ;;  %s842_s10 = scalar_lea.hbm (!%p162_p10), %s899_s3, %s551_s6 }
  0x12   : > { %v274_v22 = vsub.s32 (!%p162_p10), 1, %v231_v19  ;;  %v278_v23 = vsub.s32 (!%p162_p10), 5, %v231_v19  ;;  %v232_v24 = vsub.s32 (!%p162_p10), 0, %v231_v19  ;;  %v236_v25 = vsub.s32 (!%p162_p10), 4, %v231_v19  ;;  %s829_s5 = scalar_lea.vmem (!%p162_p10), [#allocation2], %s542_s4  ;;  %s707_s18 = smov (!%p162_p10), [#allocation2]  }
  0x13   : > { %v324_v26 = vsub.s32 (!%p162_p10), 2, %v231_v19  ;;  %v328_v27 = vsub.s32 (!%p162_p10), 6, %v231_v19  ;;  %v374_v37 = vsub.s32 (!%p162_p10), 3, %v231_v19  ;;  %v378_v38 = vsub.s32 (!%p162_p10), 7, %v231_v19  ;;  %s458_s7 = sshll.u32 (!%p162_p10), %s829_s5, 4  ;;  %s627_s19 = sshll.u32 (!%p162_p10), %s707_s18, 4  ;;  %s844_s7 = int_to_ptr.vmem [resolvable:$true] %s458_s7  ;;  %s628_s19 = int_to_ptr.vmem [resolvable:$false] %s627_s19 }
  0x14   : > { %226 = vperm.xlu1 (!%p162_p10), %614, %v204_v3   ;;  %216 = vperm.xlu0 (!%p162_p10), %613, %v202_v4   ;;  %s623_s11 = scalar_lea.vmem (!%p162_p10), %s844_s7, 1024  ;;  %s629_s21 = scalar_lea.vmem (!%p162_p10), %s628_s19, 2048 }
  0x15   : > { %p624_p12 = scmp.ne.s32.totalorder (!%p162_p10), %s844_s7, %s623_s11  ;;  %p630_p1 = scmp.lt.s32.totalorder (!%p162_p10), %s844_s7, %s628_s19 }
  0x16   : > { %s191_s23 = scalar_select %p190_p11, %s693_s15, 1 }
  0x17   : > { %s850_s15 = scalar_lea.sflag [#allocation3], %s186_s30  ;;  %p625_p13 = pnand %p624_p12, %p770_p4 }
  0x18   : > { %616 = vset.pattern.permute.xlu1 %v704_v5  ;;  %615 = vset.pattern.permute.xlu0 %v704_v5  ;;  %s550_s26 = sshll.u32 %s191_s23, 3  ;;  %p631_p2 = scmp.lt.s32.totalorder %s629_s21, %s623_s11 }
  0x19   : > { %261 = vperm.xlu1 %616, %v202_v4   ;;  %257 = vperm.xlu0 %615, %v201_v1   ;;  %s197_s29 = scalar_lea.vmem %s896_s0, %s550_s26  ;;  %p626_p0 = pneg %p625_p13 }
  0x1a   : > { %v200_v28 = vld [vmem:[%s197_s29] sm:$0xff]  ;;  %p632_p3 = por %p631_p2, %p630_p1 }
  0x1b   : > { %v275_v29 = vrot.slane %v200_v28, %v274_v22  ;;  %v279_v30 = vrot.slane %v200_v28, %v278_v23  ;;  %v233_v33 = vrot.slane %v200_v28, %v232_v24  ;;  %v237_v34 = vrot.slane %v200_v28, %v236_v25 }
  0x1c   : > { %v325_v35 = vrot.slane %v200_v28, %v324_v26  ;;  %v329_v36 = vrot.slane %v200_v28, %v328_v27  ;;  %v375_v47 = vrot.slane %v200_v28, %v374_v37  ;;  %v379_v48 = vrot.slane %v200_v28, %v378_v38  ;;  %p633_p5 = pnand %p632_p3, %p626_p0 }
  0x1d   : > { %265 = vperm.xlu1 %616, %v203_v0   ;;  %269 = vperm.xlu0 %615, %v204_v3   ;;  %v285_v39 = vrot.slane %v275_v29, %v274_v22  ;;  %v289_v40 = vrot.slane %v279_v30, %v274_v22  ;;  %v243_v43 = vrot.slane %v233_v33, %v232_v24 }
  0x1e   : > { %v247_v44 = vrot.slane %v237_v34, %v232_v24  ;;  %v335_v45 = vrot.slane %v325_v35, %v324_v26  ;;  %v339_v46 = vrot.slane %v329_v36, %v324_v26  ;;  %v385_v63 = vrot.slane %v375_v47, %v374_v37 }
  0x21   : > { %617 = vset.pattern.permute.xlu1 %v705_v6  ;;  %618 = vset.pattern.permute.xlu0 %v705_v6 }
  0x22   : > { %307 = vperm.xlu1 %617, %v201_v1   ;;  %311 = vperm.xlu0 %618, %v202_v4  }
  0x26   : > { %315 = vperm.xlu1 %617, %v203_v0   ;;  %619 = vset.pattern.permute.xlu0 %v706_v7 }
  0x27   : > { %357 = vperm.xlu0 %619, %v201_v1  }
  0x2a   : > { %319 = vperm.xlu1 %617, %v204_v3  }
  0x2b   : > { %369 = vperm.xlu0 %619, %v204_v3  }
  0x2e   : > { %620 = vset.pattern.permute.xlu1 %v706_v7 }
  0x2f   : > { %361 = vperm.xlu1 %620, %v202_v4   ;;  %622 = vset.pattern.permute.xlu0 %v703_v2 }
  0x30   : > { %413 = vperm.xlu0 %622, %v206_v8  }
  0x33   : > { %365 = vperm.xlu1 %620, %v203_v0   ;;  %v389_v0 = vrot.slane %v379_v48, %v374_v37 }
  0x37   : > { %621 = vset.pattern.permute.xlu1 %v703_v2 }
  0x38   : > { %408 = vperm.xlu1 %621, %v205_v9  }
  0x3c   : > { %418 = vperm.xlu1 %621, %v207_v10  }
  0x40   : > { %423 = vperm.xlu1 %621, %v208_v11  }
  0x8f   : > { %v809_v12 = vpop.permute.xlu1 %221  ;;  %v212_v13 = vpop.permute.xlu0 %211 }
  0x90   : > { %v248_v54 = vmul.f32 %v243_v43, %v212_v13  ;;  %v249_v55 = vmul.f32 %v247_v44, %v212_v13  ;;  %v252_v19 = vmul.f32 %v243_v43, %v809_v12  ;;  %v253_v22 = vmul.f32 %v247_v44, %v809_v12 }
  0x93   : > { %v812_v14 = vpop.permute.xlu1 %226  ;;  %v217_v15 = vpop.permute.xlu0 %216 }
  0x94   : > { %v250_v49 = vmul.f32 %v243_v43, %v217_v15  ;;  %v251_v50 = vmul.f32 %v247_v44, %v217_v15  ;;  %v255_v30 = vmul.f32 %v247_v44, %v812_v14 }
  0x98   : > { %v262_v17 = vpop.permute.xlu1 %261  ;;  %v258_v18 = vpop.permute.xlu0 %257 }
  0x99   : > { %v292_v51 = vmul.f32 %v285_v39, %v262_v17  ;;  %v293_v52 = vmul.f32 %v289_v40, %v262_v17  ;;  %v290_v56 = vmul.f32 %v285_v39, %v258_v18  ;;  %v291_v57 = vmul.f32 %v289_v40, %v258_v18 }
  0x9b   : > { %v300_v61 = vadd.f32 %v292_v51, %v250_v49  ;;  %v301_v62 = vadd.f32 %v293_v52, %v251_v50  ;;  %v298_v1 = vadd.f32 %v290_v56, %v248_v54  ;;  %v299_v2 = vadd.f32 %v291_v57, %v249_v55 }
  0x9c   : > { %v266_v20 = vpop.permute.xlu1 %265  ;;  %v815_v21 = vpop.permute.xlu0 %269 }
  0x9d   : > { %v294_v10 = vmul.f32 %v285_v39, %v266_v20  ;;  %v295_v11 = vmul.f32 %v289_v40, %v266_v20  ;;  %v296_v23 = vmul.f32 %v285_v39, %v815_v21  ;;  %v297_v24 = vmul.f32 %v289_v40, %v815_v21 }
  0x9e   : > { %v254_v20 = vmul.f32 %v243_v43, %v812_v14 }
  0x9f   : > { %v302_v33 = vadd.f32 %v294_v10, %v252_v19  ;;  %v303_v34 = vadd.f32 %v295_v11, %v253_v22  ;;  %v305_v14 = vadd.f32 %v297_v24, %v255_v30 }
  0xa0   : > { %v304_v39 = vadd.f32 %v296_v23, %v254_v20 }
  0xa1   : > { %v308_v31 = vpop.permute.xlu1 %307  ;;  %v312_v32 = vpop.permute.xlu0 %311 }
  0xa2   : > { %v342_v58 = vmul.f32 %v335_v45, %v312_v32  ;;  %v343_v59 = vmul.f32 %v339_v46, %v312_v32  ;;  %v340_v3 = vmul.f32 %v335_v45, %v308_v31  ;;  %v341_v4 = vmul.f32 %v339_v46, %v308_v31 }
  0xa4   : > { %v350_v6 = vadd.f32 %v342_v58, %v300_v61  ;;  %v351_v7 = vadd.f32 %v343_v59, %v301_v62  ;;  %v348_v26 = vadd.f32 %v340_v3, %v298_v1  ;;  %v349_v27 = vadd.f32 %v341_v4, %v299_v2 }
  0xa5   : > { %v316_v41 = vpop.permute.xlu1 %315 }
  0xa6   : > { %v358_v42 = vpop.permute.xlu0 %357  ;;  %v344_v31 = vmul.f32 %v335_v45, %v316_v41  ;;  %v345_v32 = vmul.f32 %v339_v46, %v316_v41 }
  0xa7   : > { %v390_v15 = vmul.f32 %v385_v63, %v358_v42  ;;  %v391_v16 = vmul.f32 %v389_v0, %v358_v42 }
  0xa8   : > { %v352_v41 = vadd.f32 %v344_v31, %v302_v33  ;;  %v353_v42 = vadd.f32 %v345_v32, %v303_v34 }
  0xa9   : > { %v320_v53 = vpop.permute.xlu1 %319  ;;  %v398_v12 = vadd.f32 %v390_v15, %v348_v26  ;;  %v399_v21 = vadd.f32 %v391_v16, %v349_v27 }
  0xaa   : > { %v370_v60 = vpop.permute.xlu0 %369  ;;  %v346_v35 = vmul.f32 %v335_v45, %v320_v53  ;;  %v347_v36 = vmul.f32 %v339_v46, %v320_v53 }
  0xab   : > { %v396_v47 = vmul.f32 %v385_v63, %v370_v60  ;;  %v397_v48 = vmul.f32 %v389_v0, %v370_v60 }
  0xac   : > { %v354_v49 = vadd.f32 %v346_v35, %v304_v39  ;;  %v355_v50 = vadd.f32 %v347_v36, %v305_v14 }
  0xae   : > { %v362_v5 = vpop.permute.xlu1 %361  ;;  %v404_v54 = vadd.f32 %v396_v47, %v354_v49  ;;  %v405_v55 = vadd.f32 %v397_v48, %v355_v50 }
  0xaf   : > { %v392_v8 = vmul.f32 %v385_v63, %v362_v5  ;;  %v393_v9 = vmul.f32 %v389_v0, %v362_v5  ;;  %v414_v13 = vpop.permute.xlu0 %413 }
  0xb1   : > { %v400_v17 = vadd.f32 %v392_v8, %v350_v6  ;;  %v401_v18 = vadd.f32 %v393_v9, %v351_v7 }
  0xb2   : > { %v366_v25 = vpop.permute.xlu1 %365 }
  0xb3   : > { %v428_v28 = vadd.f32 %v414_v13, %v400_v17  ;;  %v429_v29 = vadd.f32 %v414_v13, %v401_v18  ;;  %v394_v37 = vmul.f32 %v385_v63, %v366_v25  ;;  %v395_v38 = vmul.f32 %v389_v0, %v366_v25 }
  0xb5   : > { %436 = vst [vmem:[%s829_s5 + $0x10] sm:$0xff] %v428_v28  ;;  %437 = vst [vmem:[%s829_s5 + $0x18] sm:$0xff] %v429_v29  ;;  %v402_v45 = vadd.f32 %v394_v37, %v352_v41  ;;  %v403_v46 = vadd.f32 %v395_v38, %v353_v42 }
  0xb7   : > { %v409_v40 = vpop.permute.xlu1 %408 }
  0xb8   : > { %v426_v43 = vadd.f32 %v409_v40, %v398_v12  ;;  %v427_v44 = vadd.f32 %v409_v40, %v399_v21 }
  0xba   : > { %434 = vst [vmem:[%s829_s5] sm:$0xff] %v426_v43  ;;  %435 = vst [vmem:[%s829_s5 + $0x8] sm:$0xff] %v427_v44 }
  0xbb   : > { %v419_v51 = vpop.permute.xlu1 %418 }
  0xbc   : > { %v430_v52 = vadd.f32 %v419_v51, %v402_v45  ;;  %v431_v53 = vadd.f32 %v419_v51, %v403_v46 }
  0xbe   : > { %438 = vst [vmem:[%s829_s5 + $0x20] sm:$0xff] %v430_v52  ;;  %439 = vst [vmem:[%s829_s5 + $0x28] sm:$0xff] %v431_v53 }
  0xbf   : > { %v424_v56 = vpop.permute.xlu1 %423 }
  0xc0   : > { %v432_v57 = vadd.f32 %v424_v56, %v404_v54  ;;  %v433_v58 = vadd.f32 %v424_v56, %v405_v55 }
  0xc2   : > { %440 = vst [vmem:[%s829_s5 + $0x30] sm:$0xff] %v432_v57  ;;  %441 = vst [vmem:[%s829_s5 + $0x38] sm:$0xff] %v433_v58 }
  0xc3   : > { %636 = shalt.err (!%p633_p5)
}
  0xc4   : > { %s637_s23 = scalar_lea.hbm %s842_s10, 1024  ;;  %s641_s28 = scalar_lea.hbm %s899_s3, 2048 }
  0xc5   : > { %p638_p6 = scmp.ne.s32.totalorder %s842_s10, %s637_s23  ;;  %p642_p10 = scmp.lt.u32.totalorder %s842_s10, %s899_s3 }
  0xc6   : > { %p643_p11 = scmp.lt.u32.totalorder %s641_s28, %s637_s23  ;;  %p645_p13 = scmp.lt.u32.totalorder %s637_s23, %s842_s10 }
  0xc7   : > { %p639_p7 = pnand %p638_p6, %p770_p4 }
  0xc8   : > { %p644_p12 = por %p643_p11, %p642_p10 }
  0xc9   : > { %p640_p9 = pneg %p639_p7 }
  0xca   : > { %p646_p0 = por %p645_p13, %p644_p12 }
  0xcc   : > { %p647_p1 = pnand %p646_p0, %p640_p9 }
  0xce   : > { %650 = shalt.err (!%p647_p1)
}
  0xcf   : > { %s708_s4 = smov 256   ;;  %s709_s5 = smov 16  }
  0xd0   : > { %552 = dma.vmem_to_hbm [thread:$0]  (%p770_p4), %s844_s7, 1024, %s842_s10, %s850_s15, %s708_s4, %s708_s4, %s709_s5  }
  0xd1 PF: > { %p558_p2 = scmp.ge.s32.totalorder %s701_s17, 2  ;;  %s473_s6 = sand.u32 1, %s681_s12  }
  0xd2   : > { %s474_s8 = scalar_lea.sflag [#allocation3], %s473_s6 }
  0xd3   : > { %p555_p3 = pnand %p558_p2, %p777_p8 }
  0xd5   : > { %676 = dma.done.wait (!%p555_p3), %s474_s8, 1024  }
  0xd6   : > { %678 = vsyncadd (!%p555_p3), %s474_s8, 4294966272  ;;  %s16_s17 = sadd.s32 1, %s701_s17   ;;  %s902_s12 = smov %s685_s13 }
  0xd7   : > { %p13_p5 = scmp.ge.s32.totalorder %s16_s17, 4   ;;  %s903_s13 = smov %s689_s14 }
  0xd8   : > { %s904_s14 = smov %s783_s25  ;;  %s905_s15 = smov %s697_s16 }
  0xd9   : > { %s906_s16 = smov %s908_s20  ;;  %15 = sbr.rel (!%p13_p5) target bundleno = 4 (0x4), region = 67 }
  0xe0   :  { %479 = vsyncpa [#allocation3], 1 }
  0xe1   :  { %481 = vsyncpa [#allocation3 + $0x1], 1 }

</bundles_post_ra>
